<compile_context>
chip_gen: v7x
topology: tpu7x:2x2x1
jax: 0.10.0
libtpu: 0.0.40
codegen_flags: <defaults>
</compile_context>

<pallas_src>
import functools

import jax
import jax.numpy as jnp
from jax.experimental import pallas as pl
from jax.experimental.pallas import tpu as pltpu

LANE = 128
SUBLANE = 8
ROW_CHUNK = 128    # rows processed per inner (unrolled) step inside a batch tile
MAX_TILE = 512     # max rows per grid step
MIN_TILE = 128     # keep ~0.35us/step grid overhead well under the step time


def _round_up(n, m):
    return ((n + m - 1) // m) * m


def _cdiv(a, b):
    return -(-a // b)


# -----------------------------------------------------------------------------
# Kernel
# -----------------------------------------------------------------------------
def np_rencoder_kernel(x_ref, w1_ref, b1_ref, w2_ref, b2_ref, w3_ref, b3_ref, o_ref):
    """Fused 3-layer MLP on one batch tile.

    x_ref : (tile, in_pad)  f32 (cast to compute dtype in-kernel)
    w1    : (in_pad, hid)   cd     w2: (hid, hid) cd     w3: (hid, out_dim) cd
    b1,b2 : (1, hid)        f32    b3: (1, out_dim) f32
    o_ref : (tile, out_dim) f32

    Matmuls accumulate in f32 on the MXU; activations run in f32.  The tile is
    processed in 128-row chunks (static unrolled loop) so the MXU / EUP / store
    slots of consecutive chunks interleave.
    """
    cd = w1_ref.dtype
    exact = cd == jnp.float32   # exact sigmoid on the f32 verification path

    def act(h):
        if exact:
            return jax.nn.sigmoid(h)
        # exp and the approx reciprocal both run on the EUP slot (co-issue with
        # MXU / VPU work); error is far inside the bf16 tolerance.
        return pl.reciprocal(1.0 + jnp.exp(-h), approx=True)

    w1 = w1_ref[...]
    w2 = w2_ref[...]
    w3 = w3_ref[...]
    b1 = b1_ref[...]
    b2 = b2_ref[...]
    b3 = b3_ref[...]

    tile_rows = x_ref.shape[0]
    for r in range(0, tile_rows, ROW_CHUNK):            # static, fully unrolled
        rows = min(ROW_CHUNK, tile_rows - r)
        x = x_ref[r:r + rows, :].astype(cd)              # in-kernel cast (free on VPU)
        h = jnp.dot(x, w1, preferred_element_type=jnp.float32) + b1
        h = act(h)
        h = jnp.dot(h.astype(cd), w2, preferred_element_type=jnp.float32) + b2
        h = act(h)
        y = jnp.dot(h.astype(cd), w3, preferred_element_type=jnp.float32) + b3
        o_ref[r:r + rows, :] = y.astype(o_ref.dtype)


# -----------------------------------------------------------------------------
# Parameter preparation (one-time, out of the hot path)
# -----------------------------------------------------------------------------
def prepare_params(params, compute_dtype=jnp.bfloat16):
    """One-time pad + cast of NP_REncoder parameters for the kernel.

    Hidden width is zero-padded to a multiple of 128 lanes; the layer-1
    contraction dim is rounded to the compute dtype's sublane packing (16 for
    bf16, 8 for f32).  The last weight is padded only along its contraction dim
    so the kernel output is exactly (.., out_dim).

    Correctness invariant: padded hidden lanes evaluate to sigmoid(0) = 0.5, so
    the padded ROWS of w2p / w3p MUST stay zero (they do) for those lanes to
    contribute nothing downstream.
    """
    cd = jnp.dtype(compute_dtype)
    in_dim, out_dim = params["w1"].shape
    hid = _round_up(out_dim, LANE)             # keep 128-wide, do NOT pad to 256
    sub = SUBLANE * (4 // cd.itemsize)         # sublane packing: 8 (f32) / 16 (bf16)
    in_pad = _round_up(in_dim, sub)

    w1p = jnp.zeros((in_pad, hid), cd).at[:in_dim, :out_dim].set(params["w1"].astype(cd))
    w2p = jnp.zeros((hid, hid), cd).at[:out_dim, :out_dim].set(params["w2"].astype(cd))
    w3p = jnp.zeros((hid, out_dim), cd).at[:out_dim, :].set(params["w3"].astype(cd))
    b1p = jnp.zeros((1, hid), jnp.float32).at[:, :out_dim].set(
        params["b1"].reshape(1, out_dim).astype(jnp.float32))
    b2p = jnp.zeros((1, hid), jnp.float32).at[:, :out_dim].set(
        params["b2"].reshape(1, out_dim).astype(jnp.float32))
    b3p = params["b3"].reshape(1, out_dim).astype(jnp.float32)
    return {"w1": w1p, "b1": b1p, "w2": w2p, "b2": b2p, "w3": w3p, "b3": b3p}


def _resident_spec(shape):
    """BlockSpec for operands whose block never changes across grid steps
    (weights / biases): constant index map + single buffering (halves their
    VMEM footprint; Pallas already skips the re-DMA across steps)."""
    index_map = lambda i: (0,) * len(shape)
    try:
        return pl.BlockSpec(shape, index_map, pipeline_mode=pl.Buffered(buffer_count=1))
    except Exception:   # older JAX without pipeline_mode on BlockSpec
        return pl.BlockSpec(shape, index_map)


def _default_batch_tile(B):
    """Even grid >= 2 (both v7x TCs busy, DMAs pipelined) with 128-512 row tiles
    (~2-4 steps per core at B~1K); never below 8 rows."""
    b8 = _round_up(B, SUBLANE)
    if b8 <= SUBLANE:
        return SUBLANE
    steps = max(2, 2 * _cdiv(b8, 2 * MAX_TILE))              # tiles <= 512 rows
    while steps < 8 and _cdiv(b8, steps + 2) >= 2 * MIN_TILE:
        steps += 2                                           # more steps while tiles stay >= 256
    return _round_up(_cdiv(b8, steps), SUBLANE)


# -----------------------------------------------------------------------------
# Forward
# -----------------------------------------------------------------------------
@functools.partial(jax.jit, static_argnames=("batch_tile",))
def np_rencoder_forward(x, prepared, *, batch_tile=None):
    """x: (B, in_dim) float32.  prepared: output of prepare_params()."""
    B, in_dim = x.shape
    w1p, w2p, w3p = prepared["w1"], prepared["w2"], prepared["w3"]
    b1p, b2p, b3p = prepared["b1"], prepared["b2"], prepared["b3"]
    in_pad, hid = w1p.shape
    out_dim = w3p.shape[1]
    assert in_pad >= in_dim, "prepared params do not match x's feature dim"
    cd_bytes = jnp.dtype(w1p.dtype).itemsize

    # ---- batch tiling: even grid >= 2 ----------------------------------------
    if batch_tile is None:
        batch_tile = _default_batch_tile(B)
    assert batch_tile % SUBLANE == 0, "batch_tile must be a multiple of 8"
    B_pad = _round_up(B, batch_tile)
    grid_n = B_pad // batch_tile
    if grid_n > 1 and grid_n % 2:
        grid_n += 1                       # keep the grid even for v7x's 2 TensorCores
        B_pad = grid_n * batch_tile

    xp = x                                # stays f32; dtype cast happens in-kernel
    if B_pad != B or in_pad != in_dim:
        xp = jnp.pad(x, ((0, B_pad - B), (0, in_pad - in_dim)))

    # ---- VMEM budget (double-buffered x/out tiles + resident weights) ---------
    w_bytes = (in_pad * hid + hid * hid + hid * out_dim) * cd_bytes
    b_bytes = (2 * hid + out_dim) * 4
    buf_bytes = (2 * batch_tile * in_pad * 4        # x tile (f32), 2 pipeline buffers
                 + 2 * batch_tile * out_dim * 4     # out tile (f32), 2 buffers
                 + 2 * (w_bytes + b_bytes))         # weights/biases (<= 2 buffers)
    # Cap at 48 MiB: leaves headroom for Mosaic scratch inside v7x's 64 MiB VMEM.
    vmem_limit = int(min(48 << 20, max(16 << 20, 2 * buf_bytes)))

    out = pl.pallas_call(
        np_rencoder_kernel,
        out_shape=jax.ShapeDtypeStruct((B_pad, out_dim), jnp.float32),
        grid_spec=pltpu.PrefetchScalarGridSpec(
            num_scalar_prefetch=0,
            grid=(grid_n,),
            in_specs=[
                pl.BlockSpec((batch_tile, in_pad), lambda i: (i, 0)),   # x tile (f32)
                _resident_spec(w1p.shape),
                _resident_spec(b1p.shape),
                _resident_spec(w2p.shape),
                _resident_spec(b2p.shape),
                _resident_spec(w3p.shape),
                _resident_spec(b3p.shape),
            ],
            out_specs=pl.BlockSpec((batch_tile, out_dim), lambda i: (i, 0)),
        ),
        compiler_params=pltpu.CompilerParams(
            dimension_semantics=("parallel",),   # batch tiles shard across v7x's 2 TCs
            vmem_limit_bytes=vmem_limit,
        ),
    )(xp, w1p, b1p, w2p, b2p, w3p, b3p)

    return out if B_pad == B else out[:B]


# -----------------------------------------------------------------------------
# Reference / init
# -----------------------------------------------------------------------------
def init_params(key, in_dim, out_dim):
    """nn.Linear default init U(-1/sqrt(fan_in), 1/sqrt(fan_in)); weights (in, out)."""
    ks = jax.random.split(key, 6)

    def linear(kw, kb, fan_in, fan_out):
        bound = 1.0 / jnp.sqrt(fan_in)
        w = jax.random.uniform(kw, (fan_in, fan_out), jnp.float32, -bound, bound)
        b = jax.random.uniform(kb, (1, fan_out), jnp.float32, -bound, bound)
        return w, b

    w1, b1 = linear(ks[0], ks[1], in_dim, out_dim)
    w2, b2 = linear(ks[2], ks[3], out_dim, out_dim)
    w3, b3 = linear(ks[4], ks[5], out_dim, out_dim)
    return {"w1": w1, "b1": b1, "w2": w2, "b2": b2, "w3": w3, "b3": b3}


def reference_forward(x, p):
    h1 = jax.nn.sigmoid(x @ p["w1"] + p["b1"])
    h2 = jax.nn.sigmoid(h1 @ p["w2"] + p["b2"])
    return h2 @ p["w3"] + p["b3"]


if __name__ == "__main__":
    key = jax.random.PRNGKey(0)
    k_x, k_p, k_x2 = jax.random.split(key, 3)

    rnn_enc_in_dim = 32
    rnn_enc_out_dim = 32
    batch = 128                          # small demo batch -> 2 grid steps of 64 rows

    x = jax.random.normal(k_x, (batch, rnn_enc_in_dim), jnp.float32)
    params = init_params(k_p, rnn_enc_in_dim, rnn_enc_out_dim)
    ref = reference_forward(x, params)

    # Exact f32 path: must match the f32 reference tightly.
    prep_f32 = prepare_params(params, compute_dtype=jnp.float32)
    out_f32 = jax.block_until_ready(np_rencoder_forward(x, prep_f32))
    assert out_f32.shape == (batch, rnn_enc_out_dim)
    assert jnp.allclose(out_f32, ref, atol=1e-5, rtol=1e-5), "f32 kernel mismatch"

    # Default bf16 path (f32 MXU accumulation + approx-reciprocal sigmoid).
    prep_bf16 = prepare_params(params)   # one-time pad/cast, out of the hot path
    out_bf16 = jax.block_until_ready(np_rencoder_forward(x, prep_bf16))
    assert out_bf16.shape == (batch, rnn_enc_out_dim)
    assert jnp.allclose(out_bf16, ref, atol=2e-2, rtol=2e-2), "bf16 kernel mismatch"

    # Ragged batch exercises the row-padding / even-grid path.
    x2 = jax.random.normal(k_x2, (60, rnn_enc_in_dim), jnp.float32)
    ref2 = reference_forward(x2, params)
    out2 = jax.block_until_ready(np_rencoder_forward(x2, prep_bf16))
    assert out2.shape == (60, rnn_enc_out_dim)
    assert jnp.allclose(out2, ref2, atol=2e-2, rtol=2e-2), "ragged-batch mismatch"

    print("KERNEL_OK")
</pallas_src>

<mosaic_0001>
module attributes {stable_mosaic.version = 11 : i64} {
  func.func @np_rencoder_kernel(%arg0: i32, %arg1: memref<64x32xf32, #tpu.memory_space<vmem>>, %arg2: memref<32x128xf32, #tpu.memory_space<vmem>>, %arg3: memref<1x128xf32, #tpu.memory_space<vmem>>, %arg4: memref<128x128xf32, #tpu.memory_space<vmem>>, %arg5: memref<1x128xf32, #tpu.memory_space<vmem>>, %arg6: memref<128x32xf32, #tpu.memory_space<vmem>>, %arg7: memref<1x32xf32, #tpu.memory_space<vmem>>, %arg8: memref<64x32xf32, #tpu.memory_space<vmem>>) attributes {dimension_semantics = [#tpu.dimension_semantics<parallel>], iteration_bounds = array<i64: 2>, scalar_prefetch = 0 : i64, scratch_operands = 0 : i64, tpu.core_type = #tpu.core_type<tc>, window_params = [{transform_indices = @transform_0, window_bounds = array<i64: 64, 32>}, {pipeline_mode = #tpu.pipeline_mode<synchronous>, transform_indices = @transform_1, window_bounds = array<i64: 32, 128>}, {pipeline_mode = #tpu.pipeline_mode<synchronous>, transform_indices = @transform_2, window_bounds = array<i64: 1, 128>}, {pipeline_mode = #tpu.pipeline_mode<synchronous>, transform_indices = @transform_3, window_bounds = array<i64: 128, 128>}, {pipeline_mode = #tpu.pipeline_mode<synchronous>, transform_indices = @transform_4, window_bounds = array<i64: 1, 128>}, {pipeline_mode = #tpu.pipeline_mode<synchronous>, transform_indices = @transform_5, window_bounds = array<i64: 128, 32>}, {pipeline_mode = #tpu.pipeline_mode<synchronous>, transform_indices = @transform_6, window_bounds = array<i64: 1, 32>}, {transform_indices = @transform_7, window_bounds = array<i64: 64, 32>}]} {
    %c0 = arith.constant 0 : index
    %c0_0 = arith.constant 0 : index
    %0 = vector.load %arg2[%c0, %c0_0] : memref<32x128xf32, #tpu.memory_space<vmem>>, vector<32x128xf32>
    %c0_1 = arith.constant 0 : index
    %c0_2 = arith.constant 0 : index
    %1 = vector.load %arg4[%c0_1, %c0_2] : memref<128x128xf32, #tpu.memory_space<vmem>>, vector<128x128xf32>
    %c0_3 = arith.constant 0 : index
    %c0_4 = arith.constant 0 : index
    %2 = vector.load %arg6[%c0_3, %c0_4] : memref<128x32xf32, #tpu.memory_space<vmem>>, vector<128x32xf32>
    %c0_5 = arith.constant 0 : index
    %c0_6 = arith.constant 0 : index
    %3 = vector.load %arg3[%c0_5, %c0_6] : memref<1x128xf32, #tpu.memory_space<vmem>>, vector<1x128xf32>
    %c0_7 = arith.constant 0 : index
    %c0_8 = arith.constant 0 : index
    %4 = vector.load %arg5[%c0_7, %c0_8] : memref<1x128xf32, #tpu.memory_space<vmem>>, vector<1x128xf32>
    %c0_9 = arith.constant 0 : index
    %c0_10 = arith.constant 0 : index
    %5 = vector.load %arg7[%c0_9, %c0_10] : memref<1x32xf32, #tpu.memory_space<vmem>>, vector<1x32xf32>
    %c0_11 = arith.constant 0 : index
    %c0_12 = arith.constant 0 : index
    %6 = vector.load %arg1[%c0_11, %c0_12] : memref<64x32xf32, #tpu.memory_space<vmem>>, vector<64x32xf32>
    %cst = arith.constant dense<0.000000e+00> : vector<64x128xf32>
    %7 = tpu.matmul %6, %0, %cst {dimension_numbers = #tpu.dot_dimension_numbers<[1], [0], [0], [1], [0, 0, 1, 1], [], []>} : vector<64x32xf32>, vector<32x128xf32>, vector<64x128xf32> -> vector<64x128xf32>
    %8 = vector.broadcast %3 : vector<1x128xf32> to vector<64x128xf32>
    %9 = arith.addf %7, %8 : vector<64x128xf32>
    %10 = arith.negf %9 : vector<64x128xf32>
    %11 = math.exp %10 : vector<64x128xf32>
    %cst_13 = arith.constant 1.000000e+00 : f32
    %12 = vector.broadcast %cst_13 : f32 to vector<64x128xf32>
    %13 = arith.addf %12, %11 : vector<64x128xf32>
    %14 = arith.divf %12, %13 : vector<64x128xf32>
    %cst_14 = arith.constant dense<0.000000e+00> : vector<64x128xf32>
    %15 = tpu.matmul %14, %1, %cst_14 {dimension_numbers = #tpu.dot_dimension_numbers<[1], [0], [0], [1], [0, 0, 1, 1], [], []>} : vector<64x128xf32>, vector<128x128xf32>, vector<64x128xf32> -> vector<64x128xf32>
    %16 = vector.broadcast %4 : vector<1x128xf32> to vector<64x128xf32>
    %17 = arith.addf %15, %16 : vector<64x128xf32>
    %18 = arith.negf %17 : vector<64x128xf32>
    %19 = math.exp %18 : vector<64x128xf32>
    %cst_15 = arith.constant 1.000000e+00 : f32
    %20 = vector.broadcast %cst_15 : f32 to vector<64x128xf32>
    %21 = arith.addf %20, %19 : vector<64x128xf32>
    %22 = arith.divf %20, %21 : vector<64x128xf32>
    %cst_16 = arith.constant dense<0.000000e+00> : vector<64x32xf32>
    %23 = tpu.matmul %22, %2, %cst_16 {dimension_numbers = #tpu.dot_dimension_numbers<[1], [0], [0], [1], [0, 0, 1, 1], [], []>} : vector<64x128xf32>, vector<128x32xf32>, vector<64x32xf32> -> vector<64x32xf32>
    %24 = vector.broadcast %5 : vector<1x32xf32> to vector<64x32xf32>
    %25 = arith.addf %23, %24 : vector<64x32xf32>
    %c0_17 = arith.constant 0 : index
    %c0_18 = arith.constant 0 : index
    %26 = vector.load %arg8[%c0_17, %c0_18] : memref<64x32xf32, #tpu.memory_space<vmem>>, vector<64x32xf32>
    tpu.vector_store %arg8[%c0_17, %c0_18], %25 {strides = array<i32>} : memref<64x32xf32, #tpu.memory_space<vmem>>, vector<64x32xf32>,
    return
  }
  func.func @transform_0(%arg0: i32) -> (i32, i32) {
    %c0_i32 = arith.constant 0 : i32
    %c0_i32_0 = arith.constant 0 : i32
    return %arg0, %c0_i32 : i32, i32
  }
  func.func @transform_1(%arg0: i32) -> (i32, i32) {
    %c0_i32 = arith.constant 0 : i32
    %c0_i32_0 = arith.constant 0 : i32
    %c0_i32_1 = arith.constant 0 : i32
    return %c0_i32, %c0_i32_0 : i32, i32
  }
  func.func @transform_2(%arg0: i32) -> (i32, i32) {
    %c0_i32 = arith.constant 0 : i32
    %c0_i32_0 = arith.constant 0 : i32
    %c0_i32_1 = arith.constant 0 : i32
    return %c0_i32, %c0_i32_0 : i32, i32
  }
  func.func @transform_3(%arg0: i32) -> (i32, i32) {
    %c0_i32 = arith.constant 0 : i32
    %c0_i32_0 = arith.constant 0 : i32
    %c0_i32_1 = arith.constant 0 : i32
    return %c0_i32, %c0_i32_0 : i32, i32
  }
  func.func @transform_4(%arg0: i32) -> (i32, i32) {
    %c0_i32 = arith.constant 0 : i32
    %c0_i32_0 = arith.constant 0 : i32
    %c0_i32_1 = arith.constant 0 : i32
    return %c0_i32, %c0_i32_0 : i32, i32
  }
  func.func @transform_5(%arg0: i32) -> (i32, i32) {
    %c0_i32 = arith.constant 0 : i32
    %c0_i32_0 = arith.constant 0 : i32
    %c0_i32_1 = arith.constant 0 : i32
    return %c0_i32, %c0_i32_0 : i32, i32
  }
  func.func @transform_6(%arg0: i32) -> (i32, i32) {
    %c0_i32 = arith.constant 0 : i32
    %c0_i32_0 = arith.constant 0 : i32
    %c0_i32_1 = arith.constant 0 : i32
    return %c0_i32, %c0_i32_0 : i32, i32
  }
  func.func @transform_7(%arg0: i32) -> (i32, i32) {
    %c0_i32 = arith.constant 0 : i32
    %c0_i32_0 = arith.constant 0 : i32
    return %arg0, %c0_i32 : i32, i32
  }
}

</mosaic_0001>

<bundles_post_ra>
// kernel: np_rencoder_forward.1
= control target key start
LH: loop header
LB: loop body
LE: loop exit
PB: predicated region body
PF: predicated region fallthrough
CT: control target
= control target key end

     0   :  { %s1245_s24 = smov 0   ;;  %s1402_s0 = inlined_call_operand.vmem [shape: f32[128,32], index: 0, kind: input, shape index: {}]   ;;  %s1403_s1 = inlined_call_operand.vmem [shape: f32[32,128], index: 1, kind: input, shape index: {}]   ;;  %s1404_s2 = inlined_call_operand.vmem [shape: f32[1,128], index: 2, kind: input, shape index: {}]   ;;  %s1405_s3 = inlined_call_operand.vmem [shape: f32[128,128], index: 3, kind: input, shape index: {}]   ;;  %s1406_s4 = inlined_call_operand.vmem [shape: f32[1,128], index: 4, kind: input, shape index: {}]   ;;  %s1407_s5 = inlined_call_operand.vmem [shape: f32[128,32], index: 5, kind: input, shape index: {}]   ;;  %s1408_s6 = inlined_call_operand.vmem [shape: f32[1,32], index: 6, kind: input, shape index: {}]   ;;  %s1409_s7 = inlined_call_operand.vmem [shape: f32[128,32], index: 7, kind: output, shape index: {}]  }
   0x1 LB: > { %s847_s25 = sadd.s32 4294967295, %s1203_s24   ;;  %p851_p0 = scmp.ge.s32.totalorder %s1203_s24, 1  ;;  %s1203_s24 = sphi %s1245_s24, %s17_s24  }
   0x2   : > { %p238_p1 = scmp.lt.s32.totalorder %s1203_s24, 3 }
   0x4   : > { %p239_p2 = pnand %p851_p0, %p238_p1 }
   0x5   : > { %v282_v0 = vld [vmem:[%s1403_s1] sm:$0xff] (!%p239_p2)  ;;  %v283_v1 = vld [vmem:[%s1403_s1 + $0x8] sm:$0xff] (!%p239_p2)  ;;  %v284_v2 = vld [vmem:[%s1403_s1 + $0x10] sm:$0xff] (!%p239_p2)  ;;  %s852_s9 = sshll.u32 (!%p239_p2), %s847_s25, 3  ;;  %vm335_vm0 = vcmask (!%p239_p2), 261120  }
   0x6   : > { %242 = sbr.rel (%p239_p2) target bundleno = 732 (0x2dc), region = 48  ;;  %v1053_v3 = vpack.c.bf16 (!%p239_p2), %v283_v1, %v282_v0  ;;  %v285_v4 = vld [vmem:[%s1403_s1 + $0x18] sm:$0xff] (!%p239_p2)  ;;  %p271_p3 = scmp.lt.s32.totalorder (!%p239_p2), %s852_s9, 15  ;;  %v286_v5 = vld [vmem:[%s1405_s3] sm:$0xff] (!%p239_p2)  ;;  %v287_v6 = vld [vmem:[%s1405_s3 + $0x8] sm:$0xff] (!%p239_p2) }
   0x7   : > { %v1057_v7 = vpack.c.bf16 (!%p239_p2), %v285_v4, %v284_v2  ;;  %v1061_v8 = vpack.c.bf16 (!%p239_p2), %v287_v6, %v286_v5  ;;  %v288_v17 = vld [vmem:[%s1405_s3 + $0x10] sm:$0xff] (!%p239_p2)  ;;  %v289_v18 = vld [vmem:[%s1405_s3 + $0x18] sm:$0xff] (!%p239_p2)  ;;  %v290_v20 = vld [vmem:[%s1405_s3 + $0x20] sm:$0xff] (!%p239_p2) }
   0x8   : > { %1054 = vmatprep.subr.bf16.mxu0 (!%p239_p2), %v1053_v3  ;;  %v1065_v19 = vpack.c.bf16 (!%p239_p2), %v289_v18, %v288_v17  ;;  %v291_v21 = vld [vmem:[%s1405_s3 + $0x28] sm:$0xff] (!%p239_p2)  ;;  %v292_v23 = vld [vmem:[%s1405_s3 + $0x30] sm:$0xff] (!%p239_p2)  ;;  %v293_v24 = vld [vmem:[%s1405_s3 + $0x38] sm:$0xff] (!%p239_p2) }
   0x9   : > { %1056 = vmatpush3.bf16.msra.mxu0 (!%p239_p2), %v1053_v3  ;;  %1062 = vmatprep.subr.bf16.mxu1 (!%p239_p2), %v1061_v8  ;;  %v1069_v22 = vpack.c.bf16 (!%p239_p2), %v291_v21, %v290_v20  ;;  %v1073_v25 = vpack.c.bf16 (!%p239_p2), %v293_v24, %v292_v23  ;;  %v294_v26 = vld [vmem:[%s1405_s3 + $0x40] sm:$0xff] (!%p239_p2)  ;;  %v295_v27 = vld [vmem:[%s1405_s3 + $0x48] sm:$0xff] (!%p239_p2)  ;;  %v296_v29 = vld [vmem:[%s1405_s3 + $0x50] sm:$0xff] (!%p239_p2) }
   0xa   : > { %1058 = vmatprep.subr.bf16.mxu0 (!%p239_p2), %v1057_v7  ;;  %1064 = vmatpush3.bf16.msra.mxu1 (!%p239_p2), %v1061_v8  ;;  %v1077_v28 = vpack.c.bf16 (!%p239_p2), %v295_v27, %v294_v26  ;;  %v297_v30 = vld [vmem:[%s1405_s3 + $0x58] sm:$0xff] (!%p239_p2)  ;;  %v298_v32 = vld [vmem:[%s1405_s3 + $0x60] sm:$0xff] (!%p239_p2)  ;;  %v299_v33 = vld [vmem:[%s1405_s3 + $0x68] sm:$0xff] (!%p239_p2) }
   0xb   : > { %1066 = vmatprep.subr.bf16.mxu1 (!%p239_p2), %v1065_v19  ;;  %v1081_v31 = vpack.c.bf16 (!%p239_p2), %v297_v30, %v296_v29  ;;  %v1085_v34 = vpack.c.bf16 (!%p239_p2), %v299_v33, %v298_v32  ;;  %v300_v35 = vld [vmem:[%s1405_s3 + $0x70] sm:$0xff] (!%p239_p2)  ;;  %v301_v36 = vld [vmem:[%s1405_s3 + $0x78] sm:$0xff] (!%p239_p2)  ;;  %v302_v38 = vld [vmem:[%s1407_s5] sm:$0xff] (!%p239_p2) }
   0xc   : > { %v1089_v37 = vpack.c.bf16 (!%p239_p2), %v301_v36, %v300_v35  ;;  %v303_v39 = vld [vmem:[%s1407_s5 + $0x8] sm:$0xff] (!%p239_p2)  ;;  %v856_v41 = vld [vmem:[%s1404_s2] ss:$0 sm:$0xff] (!%p239_p2)  ;;  %v304_v26 = vld [vmem:[%s1407_s5 + $0x10] sm:$0xff] (!%p239_p2) }
   0xd   : > { %s1411_s9 = smov (!%p271_p3, %s852_s9), 15  ;;  %1060 = vmatpush3.bf16.msra.mxu0 %v1057_v7  ;;  %v1093_v40 = vpack.c.bf16 %v303_v39, %v302_v38  ;;  %v305_v27 = vld [vmem:[%s1407_s5 + $0x18] sm:$0xff]  ;;  %v306_v29 = vld [vmem:[%s1407_s5 + $0x20] sm:$0xff]  ;;  %v307_v30 = vld [vmem:[%s1407_s5 + $0x28] sm:$0xff] }
   0xe   : > { %s853_s16 = sshll.u32 %s1411_s9, 3  ;;  %1068 = vmatpush3.bf16.msra.mxu1 %v1065_v19  ;;  %v308_v32 = vld [vmem:[%s1407_s5 + $0x30] sm:$0xff]  ;;  %v309_v33 = vld [vmem:[%s1407_s5 + $0x38] sm:$0xff]  ;;  %v310_v35 = vld [vmem:[%s1407_s5 + $0x40] sm:$0xff] }
   0xf   : > { %s274_s19 = scalar_lea.vmem %s1402_s0, %s853_s16  ;;  %1070 = vmatprep.subr.bf16.mxu1 %v1069_v22  ;;  %1094 = vmatprep.subr.bf16.mxu0 %v1093_v40  ;;  %v311_v36 = vld [vmem:[%s1407_s5 + $0x48] sm:$0xff]  ;;  %v312_v38 = vld [vmem:[%s1407_s5 + $0x50] sm:$0xff]  ;;  %v313_v39 = vld [vmem:[%s1407_s5 + $0x58] sm:$0xff]  ;;  %s280_s29 = scalar_lea.vmem %s1409_s7, %s853_s16 }
  0x10   : > { %v321_v9 = vld [vmem:[%s274_s19] sm:$0xff]  ;;  %v322_v10 = vld [vmem:[%s274_s19 + $0x8] sm:$0xff]  ;;  %v323_v11 = vld [vmem:[%s274_s19 + $0x10] sm:$0xff] }
  0x11   : > { %953 = vmatprep.mubr.msk.f32.mxu0 %vm335_vm0, %v321_v9  ;;  %v324_v12 = vld [vmem:[%s274_s19 + $0x18] sm:$0xff]  ;;  %v325_v13 = vld [vmem:[%s274_s19 + $0x20] sm:$0xff]  ;;  %v326_v14 = vld [vmem:[%s274_s19 + $0x28] sm:$0xff] }
  0x12   : > { %954 = vmatmul.mubr.msk.f32.vlgmr.msra.gmra.mrb[0].mxu0 %vm335_vm0, %v322_v10  ;;  %v327_v15 = vld [vmem:[%s274_s19 + $0x30] sm:$0xff]  ;;  %v328_v16 = vld [vmem:[%s274_s19 + $0x38] sm:$0xff]  ;;  %1072 = vmatpush3.bf16.msra.mxu1 %v1069_v22 }
  0x13   : > { %956 = vmatprep.mubr.msk.f32.mxu0 %vm335_vm0, %v323_v11  ;;  %1074 = vmatprep.subr.bf16.mxu1 %v1073_v25 }
  0x14   : > { %1096 = vmatpush3.bf16.msra.mxu0 %v1093_v40  ;;  %v1113_v40 = vpack.c.bf16 %v313_v39, %v312_v38 }
  0x16   : > { %957 = vmatmul.mubr.msk.f32.gmra.mrb[2].mxu0 %vm335_vm0, %v324_v12  ;;  %1076 = vmatpush3.bf16.msra.mxu1 %v1073_v25 }
  0x17   : > { %959 = vmatprep.mubr.msk.f32.mxu0 %vm335_vm0, %v325_v13  ;;  %1078 = vmatprep.subr.bf16.mxu1 %v1077_v28 }
  0x1a   : > { %960 = vmatmul.mubr.msk.f32.gmra.mrb[4].mxu0 %vm335_vm0, %v326_v14  ;;  %1080 = vmatpush3.bf16.msra.mxu1 %v1077_v28  ;;  %v1097_v28 = vpack.c.bf16 %v305_v27, %v304_v26 }
  0x1b   : > { %962 = vmatprep.mubr.msk.f32.mxu0 %vm335_vm0, %v327_v15  ;;  %1082 = vmatprep.subr.bf16.mxu1 %v1081_v31 }
  0x1c   : > { %1098 = vmatprep.subr.bf16.mxu0 %v1097_v28 }
  0x1d   : > { %1100 = vmatpush3.bf16.msra.mxu0 %v1097_v28 }
  0x1e   : > { %963 = vmatmul.mubr.msk.f32.gmra.mrb[6].mxu0 %vm335_vm0, %v328_v16  ;;  %1084 = vmatpush3.bf16.msra.mxu1 %v1081_v31  ;;  %v1101_v31 = vpack.c.bf16 %v307_v30, %v306_v29 }
  0x1f   : > { %1086 = vmatprep.subr.bf16.mxu1 %v1085_v34 }
  0x20   : > { %1102 = vmatprep.subr.bf16.mxu0 %v1101_v31 }
  0x21   : > { %1104 = vmatpush3.bf16.msra.mxu0 %v1101_v31 }
  0x22   : > { %1088 = vmatpush3.bf16.msra.mxu1 %v1085_v34  ;;  %v1105_v34 = vpack.c.bf16 %v309_v33, %v308_v32  ;;  %v882_v32 = vld [vmem:[%s1408_s6] ss:$0 sm:$0xff] }
  0x23   : > { %1090 = vmatprep.subr.bf16.mxu1 %v1089_v37 }
  0x24   : > { %1106 = vmatprep.subr.bf16.mxu0 %v1105_v34 }
  0x25   : > { %1108 = vmatpush3.bf16.msra.mxu0 %v1105_v34 }
  0x26   : > { %1092 = vmatpush3.bf16.msra.mxu1 %v1089_v37  ;;  %v1109_v37 = vpack.c.bf16 %v311_v36, %v310_v35 }
  0x28   : > { %1110 = vmatprep.subr.bf16.mxu0 %v1109_v37 }
  0x29   : > { %1112 = vmatpush3.bf16.msra.mxu0 %v1109_v37 }
  0x2a   : > { %1114 = vmatprep.subr.bf16.mxu0 %v1113_v40 }
  0x2d   : > { %1116 = vmatpush3.bf16.msra.mxu0 %v1113_v40 }
  0xe5   : > { %v955_v42 = vpop.f32.mrb[0].mxu0 }
  0xe6   : > { %v432_v43 = vadd.f32 %v955_v42, %v856_v41  ;;  %v426_v44 = vpop.f32.mrb[1].mxu0  ;;  %v315_v42 = vld [vmem:[%s1407_s5 + $0x68] sm:$0xff] }
  0xe7   : > { %v427_v45 = vadd.f32 %v856_v41, %v426_v44  ;;  %v316_v44 = vld [vmem:[%s1407_s5 + $0x70] sm:$0xff] }
  0xe8   : > { %v866_v46 = vmul.f32 -1.442695, %v432_v43 }
  0xe9   : > { %v865_v47 = vmul.f32 -1.442695, %v427_v45  ;;  %v958_v48 = vpop.f32.mrb[2].mxu0  ;;  %v317_v45 = vld [vmem:[%s1407_s5 + $0x78] sm:$0xff] }
  0xea   : > { %1133 = vpow2.f32 %v866_v46  ;;  %v442_v49 = vadd.f32 %v958_v48, %v856_v41  ;;  %v436_v50 = vpop.f32.mrb[3].mxu0  ;;  %v1121_v46 = vpack.c.bf16 %v317_v45, %v316_v44 }
  0xeb   : > { %1135 = vpow2.f32 %v865_v47  ;;  %v437_v51 = vadd.f32 %v856_v41, %v436_v50  ;;  %v873_v47 = vld [vmem:[%s1406_s4] ss:$0 sm:$0xff] }
  0xec   : > { %v868_v52 = vmul.f32 -1.442695, %v442_v49 }
  0xed   : > { %v867_v53 = vmul.f32 -1.442695, %v437_v51  ;;  %v961_v54 = vpop.f32.mrb[4].mxu0 }
  0xee   : > { %1137 = vpow2.f32 %v868_v52  ;;  %v452_v55 = vadd.f32 %v961_v54, %v856_v41  ;;  %v446_v56 = vpop.f32.mrb[5].mxu0 }
  0xef   : > { %1139 = vpow2.f32 %v867_v53  ;;  %v447_v57 = vadd.f32 %v856_v41, %v446_v56 }
  0xf0   : > { %v870_v58 = vmul.f32 -1.442695, %v452_v55 }
  0xf1   : > { %v869_v59 = vmul.f32 -1.442695, %v447_v57  ;;  %v964_v60 = vpop.f32.mrb[6].mxu0 }
  0xf2   : > { %1141 = vpow2.f32 %v870_v58  ;;  %v462_v61 = vadd.f32 %v964_v60, %v856_v41  ;;  %v456_v62 = vpop.f32.mrb[7].mxu0 }
  0xf3   : > { %1143 = vpow2.f32 %v869_v59  ;;  %v457_v63 = vadd.f32 %v856_v41, %v456_v62  ;;  %v314_v41 = vld [vmem:[%s1407_s5 + $0x60] sm:$0xff] }
  0xf4   : > { %v1134_v0 = vpop.eup %1133  ;;  %v872_v1 = vmul.f32 -1.442695, %v462_v61  ;;  %v1117_v43 = vpack.c.bf16 %v315_v42, %v314_v41 }
  0xf5   : > { %v1136_v2 = vpop.eup %1135  ;;  %v871_v3 = vmul.f32 -1.442695, %v457_v63  ;;  %v490_v4 = vadd.f32 1.0, %v1134_v0 }
  0xf6   : > { %1145 = vpow2.f32 %v872_v1  ;;  %v489_v5 = vadd.f32 1.0, %v1136_v2  ;;  %1118 = vmatprep.subr.bf16.mxu0 %v1117_v43 }
  0xf7   : > { %1147 = vpow2.f32 %v871_v3  ;;  %1120 = vmatpush3.bf16.msra.mxu0 %v1117_v43 }
  0xf8   : > { %v1138_v6 = vpop.eup %1137  ;;  %1149 = vrcp.f32 %v489_v5  ;;  %1122 = vmatprep.subr.bf16.mxu0 %v1121_v46 }
  0xf9   : > { %v1140_v7 = vpop.eup %1139  ;;  %1151 = vrcp.f32 %v490_v4  ;;  %v492_v8 = vadd.f32 1.0, %v1138_v6 }
  0xfa   : > { %v491_v9 = vadd.f32 1.0, %v1140_v7 }
  0xfb   : > { %1124 = vmatpush3.bf16.msra.mxu0 %v1121_v46 }
  0xfc   : > { %v1142_v10 = vpop.eup %1141  ;;  %1153 = vrcp.f32 %v491_v9 }
  0xfd   : > { %v1144_v11 = vpop.eup %1143  ;;  %1155 = vrcp.f32 %v492_v8  ;;  %v494_v12 = vadd.f32 1.0, %v1142_v10 }
  0xfe   : > { %v493_v13 = vadd.f32 1.0, %v1144_v11 }
 0x100   : > { %v1146_v14 = vpop.eup %1145  ;;  %1157 = vrcp.f32 %v493_v13 }
 0x101   : > { %v1148_v15 = vpop.eup %1147  ;;  %1159 = vrcp.f32 %v494_v12  ;;  %v496_v16 = vadd.f32 1.0, %v1146_v14 }
 0x102   : > { %v1150_v17 = vpop.eup %1149  ;;  %v495_v18 = vadd.f32 1.0, %v1148_v15 }
 0x103   : > { %v1152_v19 = vpop.eup %1151  ;;  %997 = vmatprep.mubr.f32.mxu1 %v1150_v17 }
 0x104   : > { %1161 = vrcp.f32 %v495_v18  ;;  %998 = vmatmul.mubr.f32.vlgmr.msra.gmra.mrb[0].mxu1 %v1152_v19 }
 0x105   : > { %1163 = vrcp.f32 %v496_v16 }
 0x106   : > { %v1154_v20 = vpop.eup %1153 }
 0x107   : > { %1000 = vmatprep.mubr.f32.mxu1 %v1154_v20  ;;  %v1156_v21 = vpop.eup %1155 }
 0x108   : > { %1001 = vmatmul.mubr.f32.gmra.mrb[2].mxu1 %v1156_v21 }
 0x10a   : > { %v1158_v22 = vpop.eup %1157 }
 0x10b   : > { %1003 = vmatprep.mubr.f32.mxu1 %v1158_v22  ;;  %v1160_v23 = vpop.eup %1159 }
 0x10c   : > { %1004 = vmatmul.mubr.f32.gmra.mrb[4].mxu1 %v1160_v23 }
 0x10e   : > { %v1162_v24 = vpop.eup %1161 }
 0x10f   : > { %v1164_v25 = vpop.eup %1163  ;;  %1006 = vmatprep.mubr.f32.mxu1 %v1162_v24 }
 0x110   : > { %1007 = vmatmul.mubr.f32.gmra.mrb[6].mxu1 %v1164_v25 }
 0x1d7   : > { %v999_v48 = vpop.f32.mrb[0].mxu1 }
 0x1d8   : > { %v591_v49 = vadd.f32 %v999_v48, %v873_v47  ;;  %v585_v50 = vpop.f32.mrb[1].mxu1 }
 0x1d9   : > { %v586_v51 = vadd.f32 %v873_v47, %v585_v50 }
 0x1da   : > { %v875_v52 = vmul.f32 -1.442695, %v591_v49 }
 0x1db   : > { %v874_v53 = vmul.f32 -1.442695, %v586_v51  ;;  %v1002_v54 = vpop.f32.mrb[2].mxu1 }
 0x1dc   : > { %1165 = vpow2.f32 %v875_v52  ;;  %v601_v55 = vadd.f32 %v1002_v54, %v873_v47  ;;  %v595_v56 = vpop.f32.mrb[3].mxu1 }
 0x1dd   : > { %1167 = vpow2.f32 %v874_v53  ;;  %v596_v57 = vadd.f32 %v873_v47, %v595_v56 }
 0x1de   : > { %v877_v58 = vmul.f32 -1.442695, %v601_v55 }
 0x1df   : > { %v876_v59 = vmul.f32 -1.442695, %v596_v57  ;;  %v1005_v60 = vpop.f32.mrb[4].mxu1 }
 0x1e0   : > { %1169 = vpow2.f32 %v877_v58  ;;  %v611_v61 = vadd.f32 %v1005_v60, %v873_v47  ;;  %v605_v62 = vpop.f32.mrb[5].mxu1 }
 0x1e1   : > { %1171 = vpow2.f32 %v876_v59  ;;  %v606_v63 = vadd.f32 %v873_v47, %v605_v62 }
 0x1e2   : > { %v879_v0 = vmul.f32 -1.442695, %v611_v61 }
 0x1e3   : > { %v878_v1 = vmul.f32 -1.442695, %v606_v63  ;;  %v1008_v2 = vpop.f32.mrb[6].mxu1 }
 0x1e4   : > { %1173 = vpow2.f32 %v879_v0  ;;  %v621_v3 = vadd.f32 %v1008_v2, %v873_v47  ;;  %v615_v4 = vpop.f32.mrb[7].mxu1 }
 0x1e5   : > { %1175 = vpow2.f32 %v878_v1  ;;  %v616_v5 = vadd.f32 %v873_v47, %v615_v4 }
 0x1e6   : > { %v1166_v6 = vpop.eup %1165  ;;  %v881_v7 = vmul.f32 -1.442695, %v621_v3 }
 0x1e7   : > { %v1168_v8 = vpop.eup %1167  ;;  %v649_v9 = vadd.f32 1.0, %v1166_v6  ;;  %v880_v10 = vmul.f32 -1.442695, %v616_v5 }
 0x1e8   : > { %v648_v11 = vadd.f32 1.0, %v1168_v8  ;;  %1177 = vpow2.f32 %v881_v7 }
 0x1e9   : > { %1179 = vrcp.f32 %v649_v9 }
 0x1ea   : > { %v1170_v12 = vpop.eup %1169  ;;  %1181 = vrcp.f32 %v648_v11 }
 0x1eb   : > { %v1172_v13 = vpop.eup %1171  ;;  %v651_v14 = vadd.f32 1.0, %v1170_v12  ;;  %1183 = vpow2.f32 %v880_v10 }
 0x1ec   : > { %v650_v15 = vadd.f32 1.0, %v1172_v13 }
 0x1ee   : > { %v1174_v16 = vpop.eup %1173  ;;  %1185 = vrcp.f32 %v650_v15 }
 0x1ef   : > { %v1176_v17 = vpop.eup %1175  ;;  %1187 = vrcp.f32 %v651_v14  ;;  %v653_v18 = vadd.f32 1.0, %v1174_v16 }
 0x1f0   : > { %v652_v19 = vadd.f32 1.0, %v1176_v17 }
 0x1f2   : > { %v1178_v20 = vpop.eup %1177  ;;  %1189 = vrcp.f32 %v652_v19 }
 0x1f3   : > { %v1180_v21 = vpop.eup %1179  ;;  %1191 = vrcp.f32 %v653_v18  ;;  %v655_v24 = vadd.f32 1.0, %v1178_v20 }
 0x1f4   : > { %v1182_v22 = vpop.eup %1181 }
 0x1f5   : > { %v1184_v23 = vpop.eup %1183  ;;  %1041 = vmatprep.mubr.f32.mxu0 %v1182_v22 }
 0x1f6   : > { %v654_v25 = vadd.f32 1.0, %v1184_v23  ;;  %1042 = vmatmul.mubr.f32.vlgmr.msra.gmra.mrb[8].mxu0 %v1180_v21 }
 0x1f8   : > { %v1186_v26 = vpop.eup %1185  ;;  %1193 = vrcp.f32 %v654_v25 }
 0x1f9   : > { %v1188_v27 = vpop.eup %1187  ;;  %1195 = vrcp.f32 %v655_v24  ;;  %1044 = vmatprep.mubr.f32.mxu0 %v1186_v26 }
 0x1fa   : > { %1045 = vmatmul.mubr.f32.gmra.mrb[10].mxu0 %v1188_v27 }
 0x1fc   : > { %v1190_v28 = vpop.eup %1189 }
 0x1fd   : > { %v1192_v29 = vpop.eup %1191  ;;  %1047 = vmatprep.mubr.f32.mxu0 %v1190_v28 }
 0x1fe   : > { %1048 = vmatmul.mubr.f32.gmra.mrb[12].mxu0 %v1192_v29 }
 0x202   : > { %v1194_v30 = vpop.eup %1193 }
 0x203   : > { %v1196_v31 = vpop.eup %1195  ;;  %1050 = vmatprep.mubr.f32.mxu0 %v1194_v30 }
 0x204   : > { %1051 = vmatmul.mubr.f32.gmra.mrb[14].mxu0 %v1196_v31 }
 0x2c9   : > { %v1043_v33 = vpop.f32.mrb[8].mxu0 }
 0x2ca   : > { %v750_v34 = vadd.f32 %v1043_v33, %v882_v32  ;;  %v744_v35 = vpop.f32.mrb[9].mxu0 }
 0x2cb   : > { %v745_v36 = vadd.f32 %v882_v32, %v744_v35 }
 0x2cc   : > { %784 = vst.msk [vmem:[%s280_s29 + $0x8] sm:$0xff] %vm335_vm0, %v750_v34 }
 0x2cd   : > { %783 = vst.msk [vmem:[%s280_s29] sm:$0xff] %vm335_vm0, %v745_v36  ;;  %v1046_v37 = vpop.f32.mrb[10].mxu0 }
 0x2ce   : > { %v760_v38 = vadd.f32 %v1046_v37, %v882_v32  ;;  %v754_v39 = vpop.f32.mrb[11].mxu0 }
 0x2cf   : > { %v755_v40 = vadd.f32 %v882_v32, %v754_v39 }
 0x2d0   : > { %786 = vst.msk [vmem:[%s280_s29 + $0x18] sm:$0xff] %vm335_vm0, %v760_v38 }
 0x2d1   : > { %785 = vst.msk [vmem:[%s280_s29 + $0x10] sm:$0xff] %vm335_vm0, %v755_v40  ;;  %v1049_v41 = vpop.f32.mrb[12].mxu0 }
 0x2d2   : > { %v770_v42 = vadd.f32 %v1049_v41, %v882_v32  ;;  %v764_v43 = vpop.f32.mrb[13].mxu0 }
 0x2d3   : > { %v765_v44 = vadd.f32 %v882_v32, %v764_v43 }
 0x2d4   : > { %788 = vst.msk [vmem:[%s280_s29 + $0x28] sm:$0xff] %vm335_vm0, %v770_v42 }
 0x2d5   : > { %787 = vst.msk [vmem:[%s280_s29 + $0x20] sm:$0xff] %vm335_vm0, %v765_v44 }
 0x2d7   : > { %v1052_v45 = vpop.f32.mrb[14].mxu0 }
 0x2d8   : > { %v780_v46 = vadd.f32 %v1052_v45, %v882_v32  ;;  %v774_v47 = vpop.f32.mrb[15].mxu0 }
 0x2d9   : > { %v775_v48 = vadd.f32 %v882_v32, %v774_v47 }
 0x2da   : > { %790 = vst.msk [vmem:[%s280_s29 + $0x38] sm:$0xff] %vm335_vm0, %v780_v46 }
 0x2db   : > { %789 = vst.msk [vmem:[%s280_s29 + $0x30] sm:$0xff] %vm335_vm0, %v775_v48 }
 0x2dc PF: > { %s17_s24 = sadd.s32 1, %s1203_s24  }
 0x2dd   : > { %p14_p4 = scmp.ge.s32.totalorder %s17_s24, 4  }
 0x2df   :  { %16 = sbr.rel (!%p14_p4) target bundleno = 1 (0x1), region = 78 }

</bundles_post_ra>
